<compile_context>
chip_gen: v7x
topology: tpu7x:2x2x1
jax: 0.10.0
libtpu: 0.0.40
codegen_flags: <defaults>
</compile_context>

<pallas_src>
import jax
import jax.numpy as jnp
from jax.experimental import pallas as pl
from jax.experimental.pallas import tpu as pltpu

# ---- small-shape config (stand-in for 3x224x224 -> 2048x7x7) ----
N = 2
C_IN = 3
H_IN = W_IN = 28
KSTRIDE = 4                      # 4x4 conv, stride 4 -> 7x7 feature map
H_F = W_F = H_IN // KSTRIDE      # 7
SPATIAL = H_F * W_F              # 49
SPATIAL_PAD = 56                 # padded to a multiple of 8 sublanes
PATCH = KSTRIDE * KSTRIDE * C_IN # 48
C_FEAT = 128                     # stand-in for ResNet50's 2048 (lane-dense)
INTER_DIM = 32
NUM_ATTRIBUTE = 16
NUM_CATEGORY = 8
HEAD_WIDTH = 128                 # packed head slab: [inter | out1 | out2 | pad]
_O1 = INTER_DIM                        # out1 (attribute) lane offset
_O2 = INTER_DIM + NUM_ATTRIBUTE        # out2 (category) lane offset
_O3 = _O2 + NUM_CATEGORY               # end of valid lanes


# ------------------------- fused Pallas kernel -------------------------

def fused_kernel(p_ref, cw_ref, cb_ref, mask_ref, hw_ref, hb_ref,
                 feat_ref, head_ref):
    # "backbone": im2col conv as one batched matmul + bias + ReLU.
    # p_ref: (N*SPATIAL_PAD, PATCH), cw_ref: (PATCH, C_FEAT), cb_ref: (1, C_FEAT)
    feat = jnp.dot(p_ref[...], cw_ref[...], preferred_element_type=jnp.float32)
    feat = jnp.maximum(feat + cb_ref[...], 0.0)                 # (N*56, C_FEAT)

    # Unmasked lane-dense store.  Invariant: spatial pad rows (49..55 per sample)
    # contain relu(conv_b); the wrapper slices them off and never reads them.
    feat3 = feat.reshape(N, SPATIAL_PAD, C_FEAT)
    feat_ref[...] = feat3

    # AvgPool2d(7): mask only the pooling operand with the precomputed 0/1 row
    # mask (lane-broadcast vmul), sublane-sum, * 1/49.  No in-kernel iota/select.
    masked = feat * mask_ref[...]                               # (N*56, C_FEAT)
    pooled = jnp.sum(masked.reshape(N, SPATIAL_PAD, C_FEAT), axis=1) * (1.0 / SPATIAL)

    # Single fused head matmul: W' = fcw_pad @ (I + hw), b' = fcb_pad + fcb_pad@hw + hb
    # (precomputed host-side).  Lanes [0:32]=inter (exact), [32:48]=out1, [48:56]=out2.
    head_ref[...] = (jnp.dot(pooled, hw_ref[...],
                             preferred_element_type=jnp.float32) + hb_ref[...])


# ------------------------- wrappers -------------------------

def im2col_padded(x_nchw):
    # (N, Cin, H, W) -> (N*SPATIAL_PAD, kh*kw*Cin), non-overlapping 4x4 patches,
    # spatial axis zero-padded 49 -> 56.
    x = jnp.transpose(x_nchw, (0, 2, 3, 1))                    # NHWC
    x = x.reshape(N, H_F, KSTRIDE, W_F, KSTRIDE, C_IN)
    x = jnp.transpose(x, (0, 1, 3, 2, 4, 5))                   # (N,7,7,kh,kw,Cin)
    p = x.reshape(N, SPATIAL, PATCH)
    p = jnp.pad(p, ((0, 0), (0, SPATIAL_PAD - SPATIAL), (0, 0)))
    return p.reshape(N * SPATIAL_PAD, PATCH)


def prepare_packed_params(params):
    """One-time host-side packing/fusion of the head weights (NOT per-call).

    Returns the arrays the Pallas forward consumes directly:
      conv_w (PATCH, C_FEAT), conv_b (1, C_FEAT),
      row_mask (N*SPATIAL_PAD, 1)  0/1 valid-row mask for pooling,
      head_w (C_FEAT, 128), head_b (1, 128)  fused fc -> (fc2|fc3) head.
    """
    # fc padded to 128 output lanes: lanes [0:32] = fc_w, rest 0.
    fcw_pad = jnp.zeros((C_FEAT, HEAD_WIDTH), jnp.float32).at[:, :INTER_DIM].set(params["fc_w"])
    fcb_pad = jnp.zeros((1, HEAD_WIDTH), jnp.float32).at[:, :INTER_DIM].set(params["fc_b"])
    # fc2 | fc3 packed into one (128,128) second-stage weight; outputs land in [32:56].
    hw = jnp.zeros((HEAD_WIDTH, HEAD_WIDTH), jnp.float32)
    hw = hw.at[:INTER_DIM, _O1:_O2].set(params["fc2_w"])
    hw = hw.at[:INTER_DIM, _O2:_O3].set(params["fc3_w"])
    hb = jnp.zeros((1, HEAD_WIDTH), jnp.float32)
    hb = hb.at[:, _O1:_O2].set(params["fc2_b"])
    hb = hb.at[:, _O2:_O3].set(params["fc3_b"])
    # Fuse the two dependent matmuls: head = pooled @ W' + b'
    #   W' = fcw_pad @ (I + hw)   (columns 0:32 equal fc_w exactly since hw[:, :32]=0)
    #   b' = fcb_pad + fcb_pad @ hw + hb
    head_w = fcw_pad + fcw_pad @ hw
    head_b = fcb_pad + fcb_pad @ hw + hb
    # 0/1 pooling row mask, replicated per sample (lane-broadcast inside the kernel).
    row_mask = (jnp.arange(SPATIAL_PAD) < SPATIAL).astype(jnp.float32).reshape(SPATIAL_PAD, 1)
    row_mask = jnp.tile(row_mask, (N, 1))                      # (N*SPATIAL_PAD, 1)
    return {
        "conv_w": params["conv_w"],
        "conv_b": params["conv_b"],
        "row_mask": row_mask,
        "head_w": head_w,
        "head_b": head_b,
    }


@jax.jit
def f_model_forward(x_nchw, packed):
    patches = im2col_padded(x_nchw)                            # (N*56, 48)

    feat_pad, head_slab = pl.pallas_call(
        fused_kernel,
        out_shape=(
            jax.ShapeDtypeStruct((N, SPATIAL_PAD, C_FEAT), jnp.float32),
            jax.ShapeDtypeStruct((N, HEAD_WIDTH), jnp.float32),
        ),
        grid=(1,),
        in_specs=[
            pl.BlockSpec((N * SPATIAL_PAD, PATCH), lambda i: (0, 0)),
            pl.BlockSpec((PATCH, C_FEAT), lambda i: (0, 0)),
            pl.BlockSpec((1, C_FEAT), lambda i: (0, 0)),
            pl.BlockSpec((N * SPATIAL_PAD, 1), lambda i: (0, 0)),
            pl.BlockSpec((C_FEAT, HEAD_WIDTH), lambda i: (0, 0)),
            pl.BlockSpec((1, HEAD_WIDTH), lambda i: (0, 0)),
        ],
        out_specs=(
            pl.BlockSpec((N, SPATIAL_PAD, C_FEAT), lambda i: (0, 0, 0)),
            pl.BlockSpec((N, HEAD_WIDTH), lambda i: (0, 0)),
        ),
        compiler_params=pltpu.CompilerParams(
            dimension_semantics=("arbitrary",)),
    )(patches, packed["conv_w"], packed["conv_b"], packed["row_mask"],
      packed["head_w"], packed["head_b"])

    # Unpack.  The NHWC->NCHW transpose is kept only to match the PyTorch return
    # layout (N, C', 7, 7); drop it if downstream can consume the lane-dense NHWC slab.
    feat = feat_pad[:, :SPATIAL, :]                            # (N, 49, C') valid rows
    x_feat = jnp.transpose(feat.reshape(N, H_F, W_F, C_FEAT), (0, 3, 1, 2))
    inter = head_slab[:, :INTER_DIM]
    out1 = head_slab[:, _O1:_O2]
    out2 = head_slab[:, _O2:_O3]
    return out2, out1, inter, x_feat


def init_params(key):
    ks = jax.random.split(key, 8)
    s = 0.05
    return {
        # conv weight stored as (kh*kw*Cin, Cout) for the im2col matmul
        "conv_w": s * jax.random.normal(ks[0], (PATCH, C_FEAT), jnp.float32),
        "conv_b": s * jax.random.normal(ks[1], (1, C_FEAT), jnp.float32),
        # fc weights stored as (in, out)  (transpose of torch nn.Linear layout)
        "fc_w":  s * jax.random.normal(ks[2], (C_FEAT, INTER_DIM), jnp.float32),
        "fc_b":  s * jax.random.normal(ks[3], (1, INTER_DIM), jnp.float32),
        "fc2_w": s * jax.random.normal(ks[4], (INTER_DIM, NUM_ATTRIBUTE), jnp.float32),
        "fc2_b": s * jax.random.normal(ks[5], (1, NUM_ATTRIBUTE), jnp.float32),
        "fc3_w": s * jax.random.normal(ks[6], (INTER_DIM, NUM_CATEGORY), jnp.float32),
        "fc3_b": s * jax.random.normal(ks[7], (1, NUM_CATEGORY), jnp.float32),
    }


def f_model_reference(x_nchw, params):
    # pure-JAX reference for correctness checking (unpadded, unfused path)
    patches = im2col_padded(x_nchw).reshape(N, SPATIAL_PAD, PATCH)[:, :SPATIAL, :]
    feat = jnp.maximum(patches @ params["conv_w"] + params["conv_b"], 0.0)
    x_feat = jnp.transpose(feat.reshape(N, H_F, W_F, C_FEAT), (0, 3, 1, 2))
    pooled = jnp.mean(feat, axis=1)
    inter = pooled @ params["fc_w"] + params["fc_b"]
    out1 = inter @ params["fc2_w"] + params["fc2_b"]
    out2 = inter @ params["fc3_w"] + params["fc3_b"]
    return out2, out1, inter, x_feat


if __name__ == "__main__":
    key = jax.random.PRNGKey(0)
    k_x, k_p = jax.random.split(key)
    x = jax.random.normal(k_x, (N, C_IN, H_IN, W_IN), jnp.float32)
    params = init_params(k_p)

    # One-time packing/fusion (kept out of the per-call forward path).
    packed = jax.tree_util.tree_map(jax.block_until_ready, prepare_packed_params(params))

    out2, out1, inter, x_feat = jax.block_until_ready(f_model_forward(x, packed))

    r2, r1, ri, rx = f_model_reference(x, params)
    assert out2.shape == (N, NUM_CATEGORY)
    assert out1.shape == (N, NUM_ATTRIBUTE)
    assert inter.shape == (N, INTER_DIM)
    assert x_feat.shape == (N, C_FEAT, H_F, W_F)
    for a, b in ((out2, r2), (out1, r1), (inter, ri), (x_feat, rx)):
        assert jnp.allclose(a, b, atol=1e-4, rtol=1e-4)

    print("KERNEL_OK")
</pallas_src>

<mosaic_0001>
module attributes {stable_mosaic.version = 11 : i64} {
  func.func @fused_kernel(%arg0: i32, %arg1: memref<112x48xf32, #tpu.memory_space<vmem>>, %arg2: memref<48x128xf32, #tpu.memory_space<vmem>>, %arg3: memref<1x128xf32, #tpu.memory_space<vmem>>, %arg4: memref<112x1xf32, #tpu.memory_space<vmem>>, %arg5: memref<128x128xf32, #tpu.memory_space<vmem>>, %arg6: memref<1x128xf32, #tpu.memory_space<vmem>>, %arg7: memref<2x56x128xf32, #tpu.memory_space<vmem>>, %arg8: memref<2x128xf32, #tpu.memory_space<vmem>>) attributes {dimension_semantics = [#tpu.dimension_semantics<arbitrary>], iteration_bounds = array<i64: 1>, scalar_prefetch = 0 : i64, scratch_operands = 0 : i64, tpu.core_type = #tpu.core_type<tc>, window_params = [{pipeline_mode = #tpu.pipeline_mode<synchronous>, transform_indices = @transform_0, window_bounds = array<i64: 112, 48>}, {pipeline_mode = #tpu.pipeline_mode<synchronous>, transform_indices = @transform_1, window_bounds = array<i64: 48, 128>}, {pipeline_mode = #tpu.pipeline_mode<synchronous>, transform_indices = @transform_2, window_bounds = array<i64: 1, 128>}, {pipeline_mode = #tpu.pipeline_mode<synchronous>, transform_indices = @transform_3, window_bounds = array<i64: 112, 1>}, {pipeline_mode = #tpu.pipeline_mode<synchronous>, transform_indices = @transform_4, window_bounds = array<i64: 128, 128>}, {pipeline_mode = #tpu.pipeline_mode<synchronous>, transform_indices = @transform_5, window_bounds = array<i64: 1, 128>}, {pipeline_mode = #tpu.pipeline_mode<synchronous>, transform_indices = @transform_6, window_bounds = array<i64: 2, 56, 128>}, {pipeline_mode = #tpu.pipeline_mode<synchronous>, transform_indices = @transform_7, window_bounds = array<i64: 2, 128>}]} {
    %c0 = arith.constant 0 : index
    %c0_0 = arith.constant 0 : index
    %0 = vector.load %arg1[%c0, %c0_0] : memref<112x48xf32, #tpu.memory_space<vmem>>, vector<112x48xf32>
    %c0_1 = arith.constant 0 : index
    %c0_2 = arith.constant 0 : index
    %1 = vector.load %arg2[%c0_1, %c0_2] : memref<48x128xf32, #tpu.memory_space<vmem>>, vector<48x128xf32>
    %cst = arith.constant dense<0.000000e+00> : vector<112x128xf32>
    %2 = tpu.matmul %0, %1, %cst {dimension_numbers = #tpu.dot_dimension_numbers<[1], [0], [0], [1], [0, 0, 1, 1], [], []>} : vector<112x48xf32>, vector<48x128xf32>, vector<112x128xf32> -> vector<112x128xf32>
    %c0_3 = arith.constant 0 : index
    %c0_4 = arith.constant 0 : index
    %3 = vector.load %arg3[%c0_3, %c0_4] : memref<1x128xf32, #tpu.memory_space<vmem>>, vector<1x128xf32>
    %4 = vector.broadcast %3 : vector<1x128xf32> to vector<112x128xf32>
    %5 = arith.addf %2, %4 : vector<112x128xf32>
    %cst_5 = arith.constant 0.000000e+00 : f32
    %6 = vector.broadcast %cst_5 : f32 to vector<112x128xf32>
    %7 = arith.maximumf %5, %6 : vector<112x128xf32>
    %8 = vector.shape_cast %7 : vector<112x128xf32> to vector<2x56x128xf32>
    %c0_6 = arith.constant 0 : index
    %c0_7 = arith.constant 0 : index
    %c0_8 = arith.constant 0 : index
    %9 = vector.load %arg7[%c0_6, %c0_7, %c0_8] : memref<2x56x128xf32, #tpu.memory_space<vmem>>, vector<2x56x128xf32>
    tpu.vector_store %arg7[%c0_6, %c0_7, %c0_8], %8 {strides = array<i32>} : memref<2x56x128xf32, #tpu.memory_space<vmem>>, vector<2x56x128xf32>,
    %c0_9 = arith.constant 0 : index
    %c0_10 = arith.constant 0 : index
    %10 = vector.load %arg4[%c0_9, %c0_10] : memref<112x1xf32, #tpu.memory_space<vmem>>, vector<112x1xf32>
    %11 = vector.broadcast %10 : vector<112x1xf32> to vector<112x128xf32>
    %12 = arith.mulf %7, %11 : vector<112x128xf32>
    %13 = vector.shape_cast %12 : vector<112x128xf32> to vector<2x56x128xf32>
    %cst_11 = arith.constant dense<0.000000e+00> : vector<2x128xf32>
    %14 = vector.multi_reduction <add>, %13, %cst_11 [1] : vector<2x56x128xf32> to vector<2x128xf32>
    %cst_12 = arith.constant 0.0204081628 : f32
    %15 = vector.broadcast %cst_12 : f32 to vector<2x128xf32>
    %16 = arith.mulf %14, %15 : vector<2x128xf32>
    %c0_13 = arith.constant 0 : index
    %c0_14 = arith.constant 0 : index
    %17 = vector.load %arg5[%c0_13, %c0_14] : memref<128x128xf32, #tpu.memory_space<vmem>>, vector<128x128xf32>
    %cst_15 = arith.constant dense<0.000000e+00> : vector<2x128xf32>
    %18 = tpu.matmul %16, %17, %cst_15 {dimension_numbers = #tpu.dot_dimension_numbers<[1], [0], [0], [1], [0, 0, 1, 1], [], []>} : vector<2x128xf32>, vector<128x128xf32>, vector<2x128xf32> -> vector<2x128xf32>
    %c0_16 = arith.constant 0 : index
    %c0_17 = arith.constant 0 : index
    %19 = vector.load %arg6[%c0_16, %c0_17] : memref<1x128xf32, #tpu.memory_space<vmem>>, vector<1x128xf32>
    %20 = vector.broadcast %19 : vector<1x128xf32> to vector<2x128xf32>
    %21 = arith.addf %18, %20 : vector<2x128xf32>
    %c0_18 = arith.constant 0 : index
    %c0_19 = arith.constant 0 : index
    %22 = vector.load %arg8[%c0_18, %c0_19] : memref<2x128xf32, #tpu.memory_space<vmem>>, vector<2x128xf32>
    tpu.vector_store %arg8[%c0_18, %c0_19], %21 {strides = array<i32>} : memref<2x128xf32, #tpu.memory_space<vmem>>, vector<2x128xf32>,
    return
  }
  func.func @transform_0(%arg0: i32) -> (i32, i32) {
    %c0_i32 = arith.constant 0 : i32
    %c0_i32_0 = arith.constant 0 : i32
    %c0_i32_1 = arith.constant 0 : i32
    return %c0_i32, %c0_i32_0 : i32, i32
  }
  func.func @transform_1(%arg0: i32) -> (i32, i32) {
    %c0_i32 = arith.constant 0 : i32
    %c0_i32_0 = arith.constant 0 : i32
    %c0_i32_1 = arith.constant 0 : i32
    return %c0_i32, %c0_i32_0 : i32, i32
  }
  func.func @transform_2(%arg0: i32) -> (i32, i32) {
    %c0_i32 = arith.constant 0 : i32
    %c0_i32_0 = arith.constant 0 : i32
    %c0_i32_1 = arith.constant 0 : i32
    return %c0_i32, %c0_i32_0 : i32, i32
  }
  func.func @transform_3(%arg0: i32) -> (i32, i32) {
    %c0_i32 = arith.constant 0 : i32
    %c0_i32_0 = arith.constant 0 : i32
    %c0_i32_1 = arith.constant 0 : i32
    return %c0_i32, %c0_i32_0 : i32, i32
  }
  func.func @transform_4(%arg0: i32) -> (i32, i32) {
    %c0_i32 = arith.constant 0 : i32
    %c0_i32_0 = arith.constant 0 : i32
    %c0_i32_1 = arith.constant 0 : i32
    return %c0_i32, %c0_i32_0 : i32, i32
  }
  func.func @transform_5(%arg0: i32) -> (i32, i32) {
    %c0_i32 = arith.constant 0 : i32
    %c0_i32_0 = arith.constant 0 : i32
    %c0_i32_1 = arith.constant 0 : i32
    return %c0_i32, %c0_i32_0 : i32, i32
  }
  func.func @transform_6(%arg0: i32) -> (i32, i32, i32) {
    %c0_i32 = arith.constant 0 : i32
    %c0_i32_0 = arith.constant 0 : i32
    %c0_i32_1 = arith.constant 0 : i32
    %c0_i32_2 = arith.constant 0 : i32
    return %c0_i32, %c0_i32_0, %c0_i32_1 : i32, i32, i32
  }
  func.func @transform_7(%arg0: i32) -> (i32, i32) {
    %c0_i32 = arith.constant 0 : i32
    %c0_i32_0 = arith.constant 0 : i32
    %c0_i32_1 = arith.constant 0 : i32
    return %c0_i32, %c0_i32_0 : i32, i32
  }
}

</mosaic_0001>

<bundles_post_ra>
// kernel: f_model_forward.1
= control target key start
LH: loop header
LB: loop body
LE: loop exit
PB: predicated region body
PF: predicated region fallthrough
CT: control target
= control target key end

     0   :  { %vm52_vm0 = vcmask 392192   ;;  %v652_v3 = vmov 0   ;;  %v653_v41 = vmov 0.0|0.0   ;;  %vm654_vm1 = vmmov 0   ;;  %s933_s1 = inlined_call_operand.vmem [shape: f32[48,128], index: 1, kind: input, shape index: {}]   ;;  %s934_s0 = inlined_call_operand.vmem [shape: f32[112,48], index: 0, kind: input, shape index: {}]   ;;  %s935_s3 = inlined_call_operand.vmem [shape: f32[112,1], index: 3, kind: input, shape index: {}]   ;;  %s936_s4 = inlined_call_operand.vmem [shape: f32[128,128], index: 4, kind: input, shape index: {}]   ;;  %s937_s2 = inlined_call_operand.vmem [shape: f32[1,128], index: 2, kind: input, shape index: {}]   ;;  %s938_s6 = inlined_call_operand.vmem [shape: f32[2,56,128], index: 6, kind: output, shape index: {0}]   ;;  %s939_s5 = inlined_call_operand.vmem [shape: f32[1,128], index: 5, kind: input, shape index: {}]   ;;  %s940_s7 = inlined_call_operand.vmem [shape: f32[2,128], index: 7, kind: output, shape index: {1}]  }
   0x1   :  { %v39_v0 = vld [vmem:[%s933_s1] sm:$0xff]  ;;  %v40_v1 = vld [vmem:[%s933_s1 + $0x8] sm:$0xff]  ;;  %v41_v2 = vld [vmem:[%s933_s1 + $0x10] sm:$0xff]  ;;  %651 = vset.pattern.permute.xlu1 %v652_v3  ;;  %650 = vset.pattern.permute.xlu0 %v652_v3  ;;  %v655_v59 = vmov 0.0   ;;  %vm407_vm2 = vcmask 1041409  }
   0x2   :  { %v610_v4 = vpack.c.bf16 %v40_v1, %v39_v0  ;;  %v42_v5 = vld [vmem:[%s933_s1 + $0x18] sm:$0xff]  ;;  %v43_v7 = vld [vmem:[%s933_s1 + $0x20] sm:$0xff]  ;;  %v44_v8 = vld [vmem:[%s933_s1 + $0x28] sm:$0xff]  ;;  %622 = vmatprep.subr.bf16.mxu1 %v653_v41  ;;  %607 = vmatprep.mubr.msk.f32.mxu1 %vm654_vm1, %v655_v59 }
   0x3   :  { %v614_v6 = vpack.c.bf16 %v42_v5, %v41_v2  ;;  %v25_v9 = vld [vmem:[%s934_s0] sm:$0xff]  ;;  %v618_v10 = vpack.c.bf16 %v44_v8, %v43_v7  ;;  %v265_v11 = vld [vmem:[%s935_s3 + $0x38] sm:$0xff]  ;;  %v259_v14 = vld [vmem:[%s935_s3 + $0x8] sm:$0xff] }
   0x4   :  { %611 = vmatprep.subr.bf16.mxu0 %v610_v4  ;;  %554 = vmatprep.mubr.msk.f32.mxu0 %vm52_vm0, %v25_v9  ;;  %v258_v12 = vld [vmem:[%s935_s3] sm:$0xff]  ;;  %v26_v15 = vld [vmem:[%s934_s0 + $0x8] sm:$0xff]  ;;  %v27_v17 = vld [vmem:[%s934_s0 + $0x10] sm:$0xff] }
   0x5   :  { %613 = vmatpush3.bf16.msra.mxu0 %v610_v4  ;;  %309 = vperm.xlu1 %651, %v265_v11   ;;  %v266_v13 = vld [vmem:[%s935_s3 + $0x40] sm:$0xff]  ;;  %v267_v16 = vld [vmem:[%s935_s3 + $0x48] sm:$0xff]  ;;  %v260_v18 = vld [vmem:[%s935_s3 + $0x10] sm:$0xff] }
   0x6   :  { %615 = vmatprep.subr.bf16.mxu0 %v614_v6  ;;  %274 = vperm.xlu0 %650, %v258_v12   ;;  %v28_v19 = vld [vmem:[%s934_s0 + $0x18] sm:$0xff]  ;;  %v268_v20 = vld [vmem:[%s935_s3 + $0x50] sm:$0xff]  ;;  %v29_v21 = vld [vmem:[%s934_s0 + $0x20] sm:$0xff] }
   0x7   :  { %v261_v22 = vld [vmem:[%s935_s3 + $0x18] sm:$0xff]  ;;  %v30_v23 = vld [vmem:[%s934_s0 + $0x28] sm:$0xff]  ;;  %v31_v25 = vld [vmem:[%s934_s0 + $0x30] sm:$0xff] }
   0x8   :  { %v269_v24 = vld [vmem:[%s935_s3 + $0x58] sm:$0xff]  ;;  %v262_v26 = vld [vmem:[%s935_s3 + $0x20] sm:$0xff]  ;;  %v263_v30 = vld [vmem:[%s935_s3 + $0x28] sm:$0xff] }
   0x9   :  { %617 = vmatpush3.bf16.msra.mxu0 %v614_v6  ;;  %314 = vperm.xlu1 %651, %v266_v13   ;;  %v32_v27 = vld [vmem:[%s934_s0 + $0x38] sm:$0xff]  ;;  %v270_v28 = vld [vmem:[%s935_s3 + $0x60] sm:$0xff]  ;;  %v34_v31 = vld [vmem:[%s934_s0 + $0x48] sm:$0xff] }
   0xa   :  { %619 = vmatprep.subr.bf16.mxu0 %v618_v10  ;;  %279 = vperm.xlu0 %650, %v259_v14   ;;  %v33_v29 = vld [vmem:[%s934_s0 + $0x40] sm:$0xff]  ;;  %v271_v32 = vld [vmem:[%s935_s3 + $0x68] sm:$0xff]  ;;  %v35_v33 = vld [vmem:[%s934_s0 + $0x50] sm:$0xff] }
   0xb   :  { %v264_v34 = vld [vmem:[%s935_s3 + $0x30] sm:$0xff]  ;;  %v36_v35 = vld [vmem:[%s934_s0 + $0x58] sm:$0xff]  ;;  %v37_v36 = vld [vmem:[%s934_s0 + $0x60] sm:$0xff] }
   0xc   :  { %v38_v37 = vld [vmem:[%s934_s0 + $0x68] sm:$0xff]  ;;  %v382_v38 = vld [vmem:[%s936_s4] sm:$0xff]  ;;  %v384_v42 = vld [vmem:[%s936_s4 + $0x10] sm:$0xff] }
   0xd   :  { %621 = vmatpush3.bf16.msra.mxu0 %v618_v10  ;;  %319 = vperm.xlu1 %651, %v267_v16   ;;  %v383_v39 = vld [vmem:[%s936_s4 + $0x8] sm:$0xff]  ;;  %v385_v43 = vld [vmem:[%s936_s4 + $0x18] sm:$0xff]  ;;  %v386_v45 = vld [vmem:[%s936_s4 + $0x20] sm:$0xff] }
   0xe   :  { %284 = vperm.xlu0 %650, %v260_v18   ;;  %v623_v40 = vpack.c.bf16 %v383_v39, %v382_v38  ;;  %v626_v44 = vpack.c.bf16 %v385_v43, %v384_v42  ;;  %v387_v46 = vld [vmem:[%s936_s4 + $0x28] sm:$0xff]  ;;  %v388_v48 = vld [vmem:[%s936_s4 + $0x30] sm:$0xff]  ;;  %v389_v49 = vld [vmem:[%s936_s4 + $0x38] sm:$0xff] }
   0xf   :  { %v629_v47 = vpack.c.bf16 %v387_v46, %v386_v45  ;;  %v632_v50 = vpack.c.bf16 %v389_v49, %v388_v48  ;;  %v390_v51 = vld [vmem:[%s936_s4 + $0x40] sm:$0xff]  ;;  %v391_v52 = vld [vmem:[%s936_s4 + $0x48] sm:$0xff]  ;;  %v392_v54 = vld [vmem:[%s936_s4 + $0x50] sm:$0xff] }
  0x10   :  { %555 = vmatmul.mubr.msk.f32.vlgmr.msra.gmra.mrb[0].mxu0 %vm52_vm0, %v26_v15  ;;  %624 = vmatpush3.bf16.msra.mxu1 %v623_v40  ;;  %v635_v53 = vpack.c.bf16 %v391_v52, %v390_v51  ;;  %v393_v55 = vld [vmem:[%s936_s4 + $0x58] sm:$0xff]  ;;  %v394_v57 = vld [vmem:[%s936_s4 + $0x60] sm:$0xff]  ;;  %v395_v58 = vld [vmem:[%s936_s4 + $0x68] sm:$0xff] }
  0x11   :  { %557 = vmatprep.mubr.msk.f32.mxu0 %vm52_vm0, %v27_v17  ;;  %324 = vperm.xlu1 %651, %v268_v20   ;;  %v638_v56 = vpack.c.bf16 %v393_v55, %v392_v54  ;;  %v641_v60 = vpack.c.bf16 %v395_v58, %v394_v57  ;;  %v396_v61 = vld [vmem:[%s936_s4 + $0x70] sm:$0xff]  ;;  %v397_v62 = vld [vmem:[%s936_s4 + $0x78] sm:$0xff]  ;;  %v865_v4 = vld [vmem:[%s937_s2] ss:$0 sm:$0xff] }
  0x12   :  { %289 = vperm.xlu0 %650, %v261_v22   ;;  %625 = vmatprep.subr.bf16.mxu1 %v653_v41  ;;  %v644_v63 = vpack.c.bf16 %v397_v62, %v396_v61 }
  0x14   :  { %558 = vmatmul.mubr.msk.f32.gmra.mrb[2].mxu0 %vm52_vm0, %v28_v19  ;;  %627 = vmatpush3.bf16.msra.mxu1 %v626_v44 }
  0x15   :  { %560 = vmatprep.mubr.msk.f32.mxu0 %vm52_vm0, %v29_v21  ;;  %329 = vperm.xlu1 %651, %v269_v24  }
  0x16   :  { %294 = vperm.xlu0 %650, %v262_v26   ;;  %628 = vmatprep.subr.bf16.mxu1 %v653_v41 }
  0x18   :  { %561 = vmatmul.mubr.msk.f32.gmra.mrb[4].mxu0 %vm52_vm0, %v30_v23  ;;  %630 = vmatpush3.bf16.msra.mxu1 %v629_v47 }
  0x19   :  { %563 = vmatprep.mubr.msk.f32.mxu0 %vm52_vm0, %v31_v25  ;;  %334 = vperm.xlu1 %651, %v270_v28  }
  0x1a   :  { %299 = vperm.xlu0 %650, %v263_v30   ;;  %631 = vmatprep.subr.bf16.mxu1 %v653_v41 }
  0x1c   :  { %564 = vmatmul.mubr.msk.f32.gmra.mrb[6].mxu0 %vm52_vm0, %v32_v27  ;;  %633 = vmatpush3.bf16.msra.mxu1 %v632_v50 }
  0x1d   :  { %566 = vmatprep.mubr.msk.f32.mxu0 %vm52_vm0, %v33_v29  ;;  %339 = vperm.xlu1 %651, %v271_v32  }
  0x1e   :  { %304 = vperm.xlu0 %650, %v264_v34   ;;  %634 = vmatprep.subr.bf16.mxu1 %v653_v41 }
  0x20   :  { %567 = vmatmul.mubr.msk.f32.gmra.mrb[8].mxu0 %vm52_vm0, %v34_v31  ;;  %636 = vmatpush3.bf16.msra.mxu1 %v635_v53 }
  0x21   :  { %569 = vmatprep.mubr.msk.f32.mxu0 %vm52_vm0, %v35_v33  ;;  %637 = vmatprep.subr.bf16.mxu1 %v653_v41 }
  0x24   :  { %570 = vmatmul.mubr.msk.f32.gmra.mrb[10].mxu0 %vm52_vm0, %v36_v35  ;;  %639 = vmatpush3.bf16.msra.mxu1 %v638_v56 }
  0x25   :  { %572 = vmatprep.mubr.msk.f32.mxu0 %vm52_vm0, %v37_v36  ;;  %640 = vmatprep.subr.bf16.mxu1 %v653_v41 }
  0x28   :  { %573 = vmatmul.mubr.msk.f32.gmra.mrb[12].mxu0 %vm52_vm0, %v38_v37  ;;  %642 = vmatpush3.bf16.msra.mxu1 %v641_v60 }
  0x29   :  { %643 = vmatprep.subr.bf16.mxu1 %v653_v41 }
  0x2c   :  { %645 = vmatpush3.bf16.msra.mxu1 %v644_v63 }
  0x84   :  { %v860_v3 = vpop.permute.xlu1 %309 }
  0x85   :  { %v275_v0 = vpop.permute.xlu0 %274 }
  0x88   :  { %v867_v7 = vpop.permute.xlu1 %314 }
  0x89   :  { %v280_v1 = vpop.permute.xlu0 %279 }
  0x8c   :  { %v320_v20 = vpop.permute.xlu1 %319 }
  0x8d   :  { %v285_v2 = vpop.permute.xlu0 %284 }
  0x90   :  { %v325_v35 = vpop.permute.xlu1 %324 }
  0x91   :  { %v290_v5 = vpop.permute.xlu0 %289 }
  0x94   :  { %v330_v52 = vpop.permute.xlu1 %329 }
  0x95   :  { %v295_v14 = vpop.permute.xlu0 %294 }
  0x99   :  { %v300_v29 = vpop.permute.xlu0 %299 }
  0x9d   :  { %v305_v46 = vpop.permute.xlu0 %304 }
  0xe3   :  { %v556_v6 = vpop.f32.mrb[0].mxu0 }
  0xe4   :  { %v167_v8 = vadd.f32 %v556_v6, %v865_v4  ;;  %v161_v9 = vpop.f32.mrb[1].mxu0  ;;  %v335_v6 = vpop.permute.xlu1 %334 }
  0xe5   :  { %v162_v10 = vadd.f32 %v865_v4, %v161_v9 }
  0xe6   :  { %v231_v11 = vmax.f32 %v167_v8, 0.0 }
  0xe7   :  { %v230_v12 = vmax.f32 %v162_v10, 0.0  ;;  %v559_v13 = vpop.f32.mrb[2].mxu0 }
  0xe8   :  { %245 = vst [vmem:[%s938_s6 + $0x8] sm:$0xff] %v231_v11  ;;  %v343_v15 = vmul.f32 %v280_v1, %v231_v11  ;;  %v177_v16 = vadd.f32 %v559_v13, %v865_v4  ;;  %v171_v17 = vpop.f32.mrb[3].mxu0 }
  0xe9   :  { %244 = vst [vmem:[%s938_s6] sm:$0xff] %v230_v12  ;;  %v342_v18 = vmul.f32 %v275_v0, %v230_v12  ;;  %v172_v19 = vadd.f32 %v865_v4, %v171_v17 }
  0xea   :  { %v233_v21 = vmax.f32 %v177_v16, 0.0 }
  0xeb   :  { %v356_v22 = vadd.f32 %v343_v15, %v342_v18  ;;  %v232_v23 = vmax.f32 %v172_v19, 0.0  ;;  %v562_v24 = vpop.f32.mrb[4].mxu0  ;;  %v340_v18 = vpop.permute.xlu1 %339 }
  0xec   :  { %247 = vst [vmem:[%s938_s6 + $0x18] sm:$0xff] %v233_v21  ;;  %v187_v25 = vadd.f32 %v562_v24, %v865_v4  ;;  %v181_v26 = vpop.f32.mrb[5].mxu0  ;;  %v345_v31 = vmul.f32 %v290_v5, %v233_v21 }
  0xed   :  { %246 = vst [vmem:[%s938_s6 + $0x10] sm:$0xff] %v232_v23  ;;  %v344_v27 = vmul.f32 %v285_v2, %v232_v23  ;;  %v182_v28 = vadd.f32 %v865_v4, %v181_v26 }
  0xee   :  { %v235_v30 = vmax.f32 %v187_v25, 0.0 }
  0xef   :  { %v357_v32 = vadd.f32 %v356_v22, %v344_v27  ;;  %v234_v33 = vmax.f32 %v182_v28, 0.0  ;;  %v565_v34 = vpop.f32.mrb[6].mxu0 }
  0xf0   :  { %249 = vst [vmem:[%s938_s6 + $0x28] sm:$0xff] %v235_v30  ;;  %v197_v36 = vadd.f32 %v565_v34, %v865_v4  ;;  %v191_v37 = vpop.f32.mrb[7].mxu0  ;;  %v347_v42 = vmul.f32 %v300_v29, %v235_v30  ;;  %v504_v34 = vld [vmem:[%s939_s5] ss:$0 sm:$0xff] }
  0xf1   :  { %248 = vst [vmem:[%s938_s6 + $0x20] sm:$0xff] %v234_v33  ;;  %v346_v38 = vmul.f32 %v295_v14, %v234_v33  ;;  %v358_v39 = vadd.f32 %v357_v32, %v345_v31  ;;  %v192_v40 = vadd.f32 %v865_v4, %v191_v37 }
  0xf2   :  { %v237_v41 = vmax.f32 %v197_v36, 0.0 }
  0xf3   :  { %v359_v43 = vadd.f32 %v358_v39, %v346_v38  ;;  %v236_v44 = vmax.f32 %v192_v40, 0.0  ;;  %v568_v45 = vpop.f32.mrb[8].mxu0 }
  0xf4   :  { %251 = vst [vmem:[%s938_s6 + $0x38] sm:$0xff] %v237_v41  ;;  %v207_v47 = vadd.f32 %v568_v45, %v865_v4  ;;  %v201_v48 = vpop.f32.mrb[9].mxu0  ;;  %v349_v59 = vmul.f32 %v860_v3, %v237_v41 }
  0xf5   :  { %250 = vst [vmem:[%s938_s6 + $0x30] sm:$0xff] %v236_v44  ;;  %v348_v49 = vmul.f32 %v305_v46, %v236_v44  ;;  %v360_v50 = vadd.f32 %v359_v43, %v347_v42  ;;  %v202_v51 = vadd.f32 %v865_v4, %v201_v48 }
  0xf6   :  { %v239_v53 = vmax.f32 %v207_v47, 0.0 }
  0xf7   :  { %v361_v54 = vadd.f32 %v360_v50, %v348_v49  ;;  %v238_v55 = vmax.f32 %v202_v51, 0.0  ;;  %v571_v56 = vpop.f32.mrb[10].mxu0 }
  0xf8   :  { %253 = vst [vmem:[%s938_s6 + $0x48] sm:$0xff] %v239_v53  ;;  %v217_v57 = vadd.f32 %v571_v56, %v865_v4  ;;  %v211_v58 = vpop.f32.mrb[11].mxu0  ;;  %v351_v0 = vmul.f32 %v320_v20, %v239_v53 }
  0xf9   :  { %252 = vst [vmem:[%s938_s6 + $0x40] sm:$0xff] %v238_v55  ;;  %v350_v60 = vmul.f32 %v867_v7, %v238_v55  ;;  %v212_v61 = vadd.f32 %v865_v4, %v211_v58  ;;  %v362_v63 = vrot.slane %v361_v54, 4 }
  0xfa   :  { %v241_v62 = vmax.f32 %v217_v57, 0.0 }
  0xfb   :  { %v368_v1 = vadd.f32 %v350_v60, %v349_v59  ;;  %v240_v2 = vmax.f32 %v212_v61, 0.0  ;;  %v574_v5 = vpop.f32.mrb[12].mxu0  ;;  %v363_v12 = vadd.f32 %v362_v63, %v361_v54 }
  0xfc   :  { %255 = vst [vmem:[%s938_s6 + $0x58] sm:$0xff] %v241_v62  ;;  %v227_v3 = vadd.f32 %v574_v5, %v865_v4  ;;  %v221_v8 = vpop.f32.mrb[13].mxu0  ;;  %v353_v13 = vmul.f32 %v330_v52, %v241_v62 }
  0xfd   :  { %254 = vst [vmem:[%s938_s6 + $0x50] sm:$0xff] %v240_v2  ;;  %v352_v7 = vmul.f32 %v325_v35, %v240_v2  ;;  %v369_v9 = vadd.f32 %v368_v1, %v351_v0  ;;  %v222_v10 = vadd.f32 %v865_v4, %v221_v8  ;;  %v364_v19 = vrot.slane %v363_v12, 2 }
  0xfe   :  { %v243_v11 = vmax.f32 %v227_v3, 0.0 }
  0xff   :  { %v370_v14 = vadd.f32 %v369_v9, %v352_v7  ;;  %v242_v15 = vmax.f32 %v222_v10, 0.0  ;;  %v365_v23 = vadd.f32 %v364_v19, %v363_v12 }
 0x100   :  { %257 = vst [vmem:[%s938_s6 + $0x68] sm:$0xff] %v243_v11  ;;  %v355_v20 = vmul.f32 %v340_v18, %v243_v11 }
 0x101   :  { %256 = vst [vmem:[%s938_s6 + $0x60] sm:$0xff] %v242_v15  ;;  %v354_v16 = vmul.f32 %v335_v6, %v242_v15  ;;  %v371_v17 = vadd.f32 %v370_v14, %v353_v13  ;;  %v366_v25 = vrot.slane %v365_v23, 1 }
 0x103   :  { %v372_v21 = vadd.f32 %v371_v17, %v354_v16  ;;  %v367_v28 = vadd.f32 %v366_v25, %v365_v23 }
 0x105   :  { %v373_v4 = vadd.f32 %v372_v21, %v355_v20  ;;  %v380_v31 = vmul.f32 0.020408163, %v367_v28 }
 0x107   :  { %v374_v22 = vrot.slane %v373_v4, 4 }
 0x109   :  { %v375_v24 = vadd.f32 %v374_v22, %v373_v4 }
 0x10b   :  { %v376_v26 = vrot.slane %v375_v24, 2 }
 0x10d   :  { %v377_v27 = vadd.f32 %v376_v26, %v375_v24 }
 0x10f   :  { %v378_v29 = vrot.slane %v377_v27, 1 }
 0x111   :  { %v379_v30 = vadd.f32 %v378_v29, %v377_v27 }
 0x113   :  { %v381_v32 = vmul.f32 0.020408163, %v379_v30 }
 0x115   :  { %v408_v33 = vsel %vm407_vm2, %v381_v32, %v380_v31 }
 0x116   :  { %608 = vmatmul.mubr.f32.vlgmr.msra.gmra.mrb[0].mxu1 %v408_v33 }
 0x1e9   :  { %v476_v35 = vpop.f32.mrb[0].mxu1 }
 0x1ea   :  { %v477_v36 = vadd.f32 %v504_v34, %v476_v35  ;;  %v609_v37 = vpop.f32.mrb[1].mxu1 }
 0x1ec   :  { %480 = vst [vmem:[%s940_s7] sm:$0x3] %v477_v36 }

</bundles_post_ra>
